<compile_context>
chip_gen: v5e
topology: v5e:2x2
jax: 0.10.0
libtpu: 0.0.40
codegen_flags: <defaults>
</compile_context>

<pallas_src>
import jax
import jax.numpy as jnp
from jax.experimental import pallas as pl
from jax.experimental.pallas import tpu as pltpu

TAU = 0.1
V_THRESHOLD = 1.0
V_RESET = 0.0


def net_kernel(xt_ref, wb1_ref, wb2_ref, wb3_ref, out_ref):
    """One batch tile (lane axis) of fc1 -> LIF -> fc2 -> LIF -> fc3."""

    def layer(wb_ref, inp):
        # wb_ref: (out, in+1) bf16 packed [W | b]; inp: (in, tm) bf16.
        k = wb_ref.shape[1] - 1  # static at trace time
        h = jnp.dot(wb_ref[:, :k], inp, preferred_element_type=jnp.float32)
        # Bias is one lane -> broadcast along the lane (batch) axis.
        return h + wb_ref[:, k:k + 1].astype(jnp.float32)

    def lif(h):
        # Fresh state: v = v_reset + (-v_reset + h)/tau with v_reset = 0.
        v = h / TAU
        # Spike values are exactly {0, V_THRESHOLD}: lossless in bf16 for the next matmul.
        return jnp.where(v >= V_THRESHOLD, V_THRESHOLD, 0.0).astype(jnp.bfloat16)

    x = xt_ref[...]                     # (state_dim, tm) bf16

    s1 = lif(layer(wb1_ref, x))         # fc1 + LIF1
    s2 = lif(layer(wb2_ref, s1))        # fc2 + LIF2
    out_ref[...] = layer(wb3_ref, s2)   # fc3: Q-values, f32, lane-dense store


def dqn_net_forward(x, wb1, wb2, wb3, *, tm=1024):
    """x: (batch, state_dim).  wb_i: (out, in+1) bf16 packed [W | b].
    Returns (batch, action_dim) float32 Q-values."""
    batch, state_dim = x.shape
    action_dim = wb3.shape[0]

    # Batch lives on the lane axis inside the kernel.
    xt = x.astype(jnp.bfloat16).T       # (state_dim, batch)

    if batch <= tm:
        # Single grid step, full-dim blocks: no (8,128) constraint, no padding.
        tm_eff = batch
        grid = (1,)
    else:
        # tm is a multiple of 128 -> lane-dense tiles; >= 2 "parallel" steps so
        # both TensorCores are engaged on v7x.  A trailing partial block (batch
        # not divisible by tm) is handled by Pallas (padded reads, masked writes);
        # each output column only depends on its own input column.
        tm_eff = tm
        grid = (pl.cdiv(batch, tm_eff),)

    out_t = pl.pallas_call(
        net_kernel,
        out_shape=jax.ShapeDtypeStruct((action_dim, batch), jnp.float32),
        grid_spec=pltpu.PrefetchScalarGridSpec(
            num_scalar_prefetch=0,
            grid=grid,
            in_specs=[
                pl.BlockSpec((state_dim, tm_eff), lambda i: (0, i)),
                # Constant block index => weights DMA'd once, VMEM-resident.
                pl.BlockSpec(wb1.shape, lambda i: (0, 0)),
                pl.BlockSpec(wb2.shape, lambda i: (0, 0)),
                pl.BlockSpec(wb3.shape, lambda i: (0, 0)),
            ],
            out_specs=pl.BlockSpec((action_dim, tm_eff), lambda i: (0, i)),
        ),
        compiler_params=pltpu.CompilerParams(
            dimension_semantics=("parallel",),  # independent batch columns
        ),
    )(xt, wb1, wb2, wb3)

    return out_t.T                      # (batch, action_dim), module-faithful layout


def init_linear_packed(key, fan_in, fan_out):
    # Mimics nn.Linear default init: U(-1/sqrt(fan_in), 1/sqrt(fan_in)).
    # Packs [W | b] as (fan_out, fan_in + 1), W in nn.Linear's (out, in) layout, bf16.
    kw, kb = jax.random.split(key)
    bound = 1.0 / (fan_in ** 0.5)
    w = jax.random.uniform(kw, (fan_out, fan_in), jnp.float32, -bound, bound)
    b = jax.random.uniform(kb, (fan_out, 1), jnp.float32, -bound, bound)
    return jnp.concatenate([w, b], axis=1).astype(jnp.bfloat16)


def reference_forward(x, wb1, wb2, wb3):
    # Pure-JAX reference using the literal LIF math from the PyTorch module
    # (fresh state v = v_reset = 0).  Uses the same bf16-rounded values the
    # kernel sees, accumulated in f32.
    xf = x.astype(jnp.bfloat16).astype(jnp.float32)

    def unpack(wb):
        wbf = wb.astype(jnp.float32)
        return wbf[:, :-1], wbf[:, -1]

    def lif(h):
        v = V_RESET + (-V_RESET + h) / TAU
        return jnp.where(v >= V_THRESHOLD, V_THRESHOLD, 0.0)

    w1, b1 = unpack(wb1)
    w2, b2 = unpack(wb2)
    w3, b3 = unpack(wb3)
    h1 = lif(xf @ w1.T + b1)
    h2 = lif(h1 @ w2.T + b2)
    return h2 @ w3.T + b3


if __name__ == "__main__":
    state_dim, hidden_dim1, hidden_dim2, action_dim = 8, 32, 32, 8

    key = jax.random.PRNGKey(0)
    kx, k1, k2, k3, kx2 = jax.random.split(key, 5)

    wb1 = init_linear_packed(k1, state_dim, hidden_dim1)
    wb2 = init_linear_packed(k2, hidden_dim1, hidden_dim2)
    wb3 = init_linear_packed(k3, hidden_dim2, action_dim)

    # Small batch: single grid step, un-padded full-dim blocks.
    x_small = jax.random.normal(kx, (200, state_dim), jnp.float32)
    out_small = jax.block_until_ready(dqn_net_forward(x_small, wb1, wb2, wb3))
    ref_small = reference_forward(x_small, wb1, wb2, wb3)
    assert out_small.shape == (200, action_dim)
    assert jnp.allclose(out_small, ref_small, atol=1e-4, rtol=1e-4), \
        float(jnp.max(jnp.abs(out_small - ref_small)))

    # Larger batch: exercises the multi-step "parallel" grid with resident weights.
    x_big = jax.random.normal(kx2, (2048, state_dim), jnp.float32)
    out_big = jax.block_until_ready(dqn_net_forward(x_big, wb1, wb2, wb3))
    ref_big = reference_forward(x_big, wb1, wb2, wb3)
    assert out_big.shape == (2048, action_dim)
    assert jnp.allclose(out_big, ref_big, atol=1e-4, rtol=1e-4), \
        float(jnp.max(jnp.abs(out_big - ref_big)))

    print("KERNEL_OK")
</pallas_src>

<mosaic_0001>
module attributes {stable_mosaic.version = 11 : i64} {
  func.func @net_kernel(%arg0: i32, %arg1: memref<8x200xbf16, #tpu.memory_space<vmem>>, %arg2: memref<32x9xbf16, #tpu.memory_space<vmem>>, %arg3: memref<32x33xbf16, #tpu.memory_space<vmem>>, %arg4: memref<8x33xbf16, #tpu.memory_space<vmem>>, %arg5: memref<8x200xf32, #tpu.memory_space<vmem>>) attributes {dimension_semantics = [#tpu.dimension_semantics<parallel>], iteration_bounds = array<i64: 1>, scalar_prefetch = 0 : i64, scratch_operands = 0 : i64, tpu.core_type = #tpu.core_type<tc>, window_params = [{transform_indices = @transform_0, window_bounds = array<i64: 8, 200>}, {pipeline_mode = #tpu.pipeline_mode<synchronous>, transform_indices = @transform_1, window_bounds = array<i64: 32, 9>}, {pipeline_mode = #tpu.pipeline_mode<synchronous>, transform_indices = @transform_2, window_bounds = array<i64: 32, 33>}, {pipeline_mode = #tpu.pipeline_mode<synchronous>, transform_indices = @transform_3, window_bounds = array<i64: 8, 33>}, {transform_indices = @transform_4, window_bounds = array<i64: 8, 200>}]} {
    %c0 = arith.constant 0 : index
    %c0_0 = arith.constant 0 : index
    %0 = vector.load %arg1[%c0, %c0_0] : memref<8x200xbf16, #tpu.memory_space<vmem>>, vector<8x200xbf16>
    %c0_1 = arith.constant 0 : index
    %c0_2 = arith.constant 0 : index
    %1 = vector.load %arg2[%c0_1, %c0_2] : memref<32x9xbf16, #tpu.memory_space<vmem>>, vector<32x8xbf16>
    %cst = arith.constant dense<0.000000e+00> : vector<32x200xf32>
    %2 = tpu.matmul %1, %0, %cst {dimension_numbers = #tpu.dot_dimension_numbers<[1], [0], [0], [1], [0, 0, 1, 1], [], []>} : vector<32x8xbf16>, vector<8x200xbf16>, vector<32x200xf32> -> vector<32x200xf32>
    %c0_3 = arith.constant 0 : index
    %c8 = arith.constant 8 : index
    %3 = vector.load %arg2[%c0_3, %c8] : memref<32x9xbf16, #tpu.memory_space<vmem>>, vector<32x1xbf16>
    %4 = arith.extf %3 : vector<32x1xbf16> to vector<32x1xf32>
    %5 = vector.broadcast %4 : vector<32x1xf32> to vector<32x200xf32>
    %6 = arith.addf %2, %5 : vector<32x200xf32>
    %cst_4 = arith.constant 1.000000e-01 : f32
    %7 = vector.broadcast %cst_4 : f32 to vector<32x200xf32>
    %8 = arith.divf %6, %7 : vector<32x200xf32>
    %cst_5 = arith.constant 1.000000e+00 : f32
    %9 = vector.broadcast %cst_5 : f32 to vector<32x200xf32>
    %10 = arith.cmpf oge, %8, %9 : vector<32x200xf32>
    %cst_6 = arith.constant 1.000000e+00 : f32
    %cst_7 = arith.constant 0.000000e+00 : f32
    %11 = vector.broadcast %cst_6 : f32 to vector<32x200xf32>
    %12 = vector.broadcast %cst_7 : f32 to vector<32x200xf32>
    %13 = arith.select %10, %11, %12 : vector<32x200xi1>, vector<32x200xf32>
    %14 = arith.truncf %13 : vector<32x200xf32> to vector<32x200xbf16>
    %c0_8 = arith.constant 0 : index
    %c0_9 = arith.constant 0 : index
    %15 = vector.load %arg3[%c0_8, %c0_9] : memref<32x33xbf16, #tpu.memory_space<vmem>>, vector<32x32xbf16>
    %cst_10 = arith.constant dense<0.000000e+00> : vector<32x200xf32>
    %16 = tpu.matmul %15, %14, %cst_10 {dimension_numbers = #tpu.dot_dimension_numbers<[1], [0], [0], [1], [0, 0, 1, 1], [], []>} : vector<32x32xbf16>, vector<32x200xbf16>, vector<32x200xf32> -> vector<32x200xf32>
    %c0_11 = arith.constant 0 : index
    %c32 = arith.constant 32 : index
    %17 = vector.load %arg3[%c0_11, %c32] : memref<32x33xbf16, #tpu.memory_space<vmem>>, vector<32x1xbf16>
    %18 = arith.extf %17 : vector<32x1xbf16> to vector<32x1xf32>
    %19 = vector.broadcast %18 : vector<32x1xf32> to vector<32x200xf32>
    %20 = arith.addf %16, %19 : vector<32x200xf32>
    %cst_12 = arith.constant 1.000000e-01 : f32
    %21 = vector.broadcast %cst_12 : f32 to vector<32x200xf32>
    %22 = arith.divf %20, %21 : vector<32x200xf32>
    %cst_13 = arith.constant 1.000000e+00 : f32
    %23 = vector.broadcast %cst_13 : f32 to vector<32x200xf32>
    %24 = arith.cmpf oge, %22, %23 : vector<32x200xf32>
    %cst_14 = arith.constant 1.000000e+00 : f32
    %cst_15 = arith.constant 0.000000e+00 : f32
    %25 = vector.broadcast %cst_14 : f32 to vector<32x200xf32>
    %26 = vector.broadcast %cst_15 : f32 to vector<32x200xf32>
    %27 = arith.select %24, %25, %26 : vector<32x200xi1>, vector<32x200xf32>
    %28 = arith.truncf %27 : vector<32x200xf32> to vector<32x200xbf16>
    %c0_16 = arith.constant 0 : index
    %c0_17 = arith.constant 0 : index
    %29 = vector.load %arg4[%c0_16, %c0_17] : memref<8x33xbf16, #tpu.memory_space<vmem>>, vector<8x32xbf16>
    %cst_18 = arith.constant dense<0.000000e+00> : vector<8x200xf32>
    %30 = tpu.matmul %29, %28, %cst_18 {dimension_numbers = #tpu.dot_dimension_numbers<[1], [0], [0], [1], [0, 0, 1, 1], [], []>} : vector<8x32xbf16>, vector<32x200xbf16>, vector<8x200xf32> -> vector<8x200xf32>
    %c0_19 = arith.constant 0 : index
    %c32_20 = arith.constant 32 : index
    %31 = vector.load %arg4[%c0_19, %c32_20] : memref<8x33xbf16, #tpu.memory_space<vmem>>, vector<8x1xbf16>
    %32 = arith.extf %31 : vector<8x1xbf16> to vector<8x1xf32>
    %33 = vector.broadcast %32 : vector<8x1xf32> to vector<8x200xf32>
    %34 = arith.addf %30, %33 : vector<8x200xf32>
    %c0_21 = arith.constant 0 : index
    %c0_22 = arith.constant 0 : index
    %35 = vector.load %arg5[%c0_21, %c0_22] : memref<8x200xf32, #tpu.memory_space<vmem>>, vector<8x200xf32>
    tpu.vector_store %arg5[%c0_21, %c0_22], %34 {strides = array<i32>} : memref<8x200xf32, #tpu.memory_space<vmem>>, vector<8x200xf32>,
    return
  }
  func.func @transform_0(%arg0: i32) -> (i32, i32) {
    %c0_i32 = arith.constant 0 : i32
    %c0_i32_0 = arith.constant 0 : i32
    return %c0_i32, %arg0 : i32, i32
  }
  func.func @transform_1(%arg0: i32) -> (i32, i32) {
    %c0_i32 = arith.constant 0 : i32
    %c0_i32_0 = arith.constant 0 : i32
    %c0_i32_1 = arith.constant 0 : i32
    return %c0_i32, %c0_i32_0 : i32, i32
  }
  func.func @transform_2(%arg0: i32) -> (i32, i32) {
    %c0_i32 = arith.constant 0 : i32
    %c0_i32_0 = arith.constant 0 : i32
    %c0_i32_1 = arith.constant 0 : i32
    return %c0_i32, %c0_i32_0 : i32, i32
  }
  func.func @transform_3(%arg0: i32) -> (i32, i32) {
    %c0_i32 = arith.constant 0 : i32
    %c0_i32_0 = arith.constant 0 : i32
    %c0_i32_1 = arith.constant 0 : i32
    return %c0_i32, %c0_i32_0 : i32, i32
  }
  func.func @transform_4(%arg0: i32) -> (i32, i32) {
    %c0_i32 = arith.constant 0 : i32
    %c0_i32_0 = arith.constant 0 : i32
    return %c0_i32, %arg0 : i32, i32
  }
}

</mosaic_0001>

<bundles_post_ra>
// kernel: tpu_custom_call.1
= control target key start
LH: loop header
LB: loop body
LE: loop exit
PB: predicated region body
PF: predicated region fallthrough
CT: control target
= control target key end

     0   :  { %9 = vsyncpa [#allocation3], 0  ;;  %s557_s0 = inlined_call_operand.vmem [shape: bf16[8,200], index: 0, kind: input, shape index: {}]   ;;  %s558_s1 = inlined_call_operand.vmem [shape: bf16[32,9], index: 1, kind: input, shape index: {}]   ;;  %s559_s2 = inlined_call_operand.vmem [shape: bf16[32,33], index: 2, kind: input, shape index: {}]   ;;  %s560_s3 = inlined_call_operand.hbm [shape: bf16[8,33], index: 3, kind: input, shape index: {}]   ;;  %s561_s4 = inlined_call_operand.hbm [shape: f32[8,200], index: 4, kind: output, shape index: {}]  }
   0x1   :  { %10 = vsyncpa [#allocation4], 0  ;;  %s22_s17 = sshll.u32 %s560_s3, 4  ;;  %s461_s18 = smov [#allocation2]   ;;  %s23_s17 = int_to_ptr.hbm [resolvable:$true] %s22_s17 }
   0x2   :  { %s24_s19 = sshll.u32 %s461_s18, 4  ;;  %s25_s19 = int_to_ptr.vmem [resolvable:$true] %s24_s19 }
   0x3   :  { %27 = dma.hbm_to_vmem [thread:$0]  %s23_s17, 64, %s25_s19, [#allocation3]  }
   0x4   :  { %457 = dma.done.wait [#allocation3], 64  }
   0x5   :  { %458 = vsyncadd [#allocation3], 4294967232  ;;  %v462_v0 = vmov 8   ;;  %v33_v1 = vld [vmem:[%s557_s0] sm:$0xff]  ;;  %v36_v2 = vld [vmem:[%s558_s1 + $0x8] sm:$0xff]   ;;  %vm84_vm0 = vcmask 1043456  }
   0x6   :  { %383 = vset.pattern.permute.xlu0 %v462_v0  ;;  %v73_v3 = vunpack.c.l.b16 %v33_v1  ;;  %v74_v4 = vunpack.c.h.b16 %v33_v1  ;;  %v40_v5 = vunpack.c.l.bf16 %v36_v2  ;;  %v41_v6 = vunpack.c.h.bf16 %v36_v2  ;;  %v34_v7 = vld [vmem:[%s558_s1] sm:$0xff]   ;;  %v374_v17 = vld [vmem:[%s558_s1 + $0x8] sm:$0xff]  ;;  %s321_s12 = sshll.u32 %s561_s4, 4  ;;  %s322_s12 = int_to_ptr.hbm [resolvable:$true] %s321_s12 }
   0x7   :  { %v373_v13 = vld [vmem:[%s558_s1] sm:$0xff]  ;;  %v38_v14 = vunpack.c.l.bf16 %v34_v7  ;;  %v39_v15 = vunpack.c.h.bf16 %v34_v7  ;;  %vm77_vm1 = vcmask 64512   ;;  %v463_v18 = vmov 0.1   ;;  %v166_v23 = vld [vmem:[%s559_s2 + $0x8] sm:$0xff]  }
   0x8   :  { %v75_v8 = vpack.c.b16 %v73_v3, %v73_v3  ;;  %v76_v9 = vpack.c.b16 %v74_v4, %v74_v4  ;;  %v384_v10 = vpack.i.bf16 %v41_v6, %v40_v5  ;;  %407 = vrcp.f32 %v463_v18  ;;  %v164_v30 = vld [vmem:[%s559_s2] sm:$0xff]   ;;  %v376_v2 = vld [vmem:[%s559_s2 + $0x8] sm:$0xff] }
   0x9   :  { %v389_v16 = vpack.i.bf16 %v39_v15, %v38_v14  ;;  %v464_v27 = vmov 32   ;;  %v170_v28 = vunpack.c.l.bf16 %v166_v23  ;;  %v171_v29 = vunpack.c.h.bf16 %v166_v23  ;;  %v375_v1 = vld [vmem:[%s559_s2] sm:$0xff]  ;;  %s466_s2 = smov [#allocation5]  }
   0xa   :  { %v86_v11 = vsel %vm84_vm0, %v75_v8, 0  ;;  %v89_v12 = vsel %vm84_vm0, %v76_v9, 0  ;;  %385 = vperm.xlu0 %383, %v384_v10   ;;  %394 = vset.pattern.permute.xlu1 %v464_v27  ;;  %v168_v33 = vunpack.c.l.bf16 %v164_v30  ;;  %v169_v34 = vunpack.c.h.bf16 %v164_v30  ;;  %v275_v5 = vld [vmem:[#allocation2] sm:$0xf]  ;;  %s319_s9 = sshll.u32 %s466_s2, 4  ;;  %s320_s9 = int_to_ptr.vmem [resolvable:$true] %s319_s9 }
   0xb   :  { %98 = vmatpush.bf16.msra.mxu0 %v86_v11  ;;  %117 = vmatpush.bf16.msra.mxu1 %v89_v12  ;;  %v395_v31 = vpack.i.bf16 %v171_v29, %v170_v28  ;;  %v465_v0 = vmov 1.0|1.0   ;;  %vm202_vm15 = vcmask 261120   ;;  %v276_v6 = vunpack.c.l.bf16 %v275_v5 }
   0xc   :  { %405 = vset.pattern.permute.xlu2 %v464_v27  ;;  %v400_v38 = vpack.i.bf16 %v169_v34, %v168_v33 }
   0xd   :  { %396 = vperm.xlu1 %394, %v395_v31   ;;  %279 = vperm.xlu2 %405, %v276_v6  }
   0xe   :  { %339 = vmatmul.msk.bf16.vlgmr.msra.gmra.mxu0 %vm77_vm1, %v373_v13  ;;  %341 = vmatmul.msk.bf16.vlgmr.msra.gmra.mxu1 %vm77_vm1, %v373_v13  ;;  %v408_v21 = vpop.eup %407 }
   0xf   :  { %v130_v24 = vmul.f32 0.1, %v408_v21  ;;  %vm134_vm2 = vweird.f32 %v408_v21 }
  0x11   :  { %v131_v32 = vsub.f32 1.0, %v130_v24 }
  0x12   :  { %390 = vperm.xlu0 %383, %v389_v16  }
  0x13   :  { %v132_v35 = vmul.f32 %v408_v21, %v131_v32 }
  0x15   :  { %v133_v42 = vadd.f32 %v408_v21, %v132_v35  ;;  %401 = vperm.xlu1 %394, %v400_v38  }
  0x17   :  { %v516_v48 = vsel %vm134_vm2, %v408_v21, %v133_v42 }
  0x1a   :  { %406 = vset.pattern.permute.xlu0 %v464_v27 }
  0x1e   :  { %340 = vmatmul.msk.bf16.gmra.mxu0 %vm77_vm1, %v374_v17  ;;  %342 = vmatmul.msk.bf16.gmra.mxu1 %vm77_vm1, %v374_v17 }
  0x67   :  { %v280_v35 = vpop.permute.xlu2 %279 }
  0x7c   :  { %v386_v22 = vpop.permute.xlu0 %385 }
  0x7d   :  { %v387_v39 = vunpack.i.l.bf16 %v386_v22  ;;  %v388_v46 = vunpack.i.h.bf16 %v386_v22 }
  0x7f   :  { %v397_v7 = vpop.permute.xlu1 %396 }
  0x80   :  { %v398_v11 = vunpack.i.l.bf16 %v397_v7  ;;  %v399_v18 = vunpack.i.h.bf16 %v397_v7 }
  0x84   :  { %v391_v40 = vpop.permute.xlu0 %390 }
  0x85   :  { %v393_v41 = vunpack.i.h.bf16 %v391_v40  ;;  %v392_v43 = vunpack.i.l.bf16 %v391_v40 }
  0x87   :  { %v402_v13 = vpop.permute.xlu1 %401 }
  0x88   :  { %v404_v14 = vunpack.i.h.bf16 %v402_v13  ;;  %v403_v15 = vunpack.i.l.bf16 %v402_v13 }
  0x8b   :  { %v100_v19 = vpop.f32.mrf.mxu0  ;;  %v119_v20 = vpop.f32.mrf.mxu1 }
  0x8c   :  { %v101_v52 = vadd.f32 %v392_v43, %v100_v19  ;;  %v120_v56 = vadd.f32 %v392_v43, %v119_v20 }
  0x8e   :  { %v136_v62 = vmul.f32 %v516_v48, %v101_v52  ;;  %v137_v63 = vmul.f32 %v516_v48, %v120_v56 }
  0x90   :  { %vm144_vm11 = vcmp.ge.f32.partialorder %v136_v62, 1.0  ;;  %vm145_vm13 = vcmp.ge.f32.partialorder %v137_v63, 1.0 }
  0x93   :  { %v102_v25 = vpop.f32.mrf.mxu0  ;;  %v121_v26 = vpop.f32.mrf.mxu1 }
  0x94   :  { %v103_v47 = vadd.f32 %v393_v41, %v102_v25  ;;  %v122_v49 = vadd.f32 %v393_v41, %v121_v26 }
  0x96   :  { %v138_v58 = vmul.f32 %v516_v48, %v103_v47  ;;  %v139_v61 = vmul.f32 %v516_v48, %v122_v49 }
  0x98   :  { %vm146_vm9 = vcmp.ge.f32.partialorder %v138_v58, 1.0  ;;  %vm147_vm10 = vcmp.ge.f32.partialorder %v139_v61, 1.0 }
  0x99   :  { %vm353_vm12 = vmpackc.low %vm146_vm9, %vm144_vm11 }
  0x9a   :  { %vm359_vm14 = vmpackc.low %vm147_vm10, %vm145_vm13 }
  0x9b   :  { %v105_v36 = vpop.f32.mrf.mxu0  ;;  %v124_v37 = vpop.f32.mrf.mxu1 }
  0x9c   :  { %v106_v44 = vadd.f32 %v387_v39, %v105_v36  ;;  %v125_v45 = vadd.f32 %v387_v39, %v124_v37 }
  0x9e   :  { %v140_v55 = vmul.f32 %v516_v48, %v106_v44  ;;  %v141_v57 = vmul.f32 %v516_v48, %v125_v45 }
  0xa0   :  { %vm148_vm3 = vcmp.ge.f32.partialorder %v140_v55, 1.0  ;;  %vm149_vm7 = vcmp.ge.f32.partialorder %v141_v57, 1.0 }
  0xa3   :  { %v107_v50 = vpop.f32.mrf.mxu0  ;;  %v126_v51 = vpop.f32.mrf.mxu1 }
  0xa4   :  { %v108_v53 = vadd.f32 %v388_v46, %v107_v50  ;;  %v127_v54 = vadd.f32 %v388_v46, %v126_v51 }
  0xa6   :  { %v142_v59 = vmul.f32 %v516_v48, %v108_v53  ;;  %v143_v60 = vmul.f32 %v516_v48, %v127_v54 }
  0xa8   :  { %vm150_vm4 = vcmp.ge.f32.partialorder %v142_v59, 1.0  ;;  %vm151_vm5 = vcmp.ge.f32.partialorder %v143_v60, 1.0 }
  0xa9   :  { %vm351_vm6 = vmpackc.low %vm150_vm4, %vm148_vm3 }
  0xaa   :  { %352 = vmatpush.bf16.msk.msra.mxu2 %vm351_vm6, %v465_v0  ;;  %vm357_vm8 = vmpackc.low %vm151_vm5, %vm149_vm7 }
  0xab   :  { %358 = vmatpush.bf16.msk.msra.mxu3 %vm357_vm8, %v465_v0 }
  0xae   :  { %354 = vmatpush.bf16.msk.msra.mxu2 %vm353_vm12, %v465_v0  ;;  %vm312_vm12 = vcmask 588800  }
  0xaf   :  { %360 = vmatpush.bf16.msk.msra.mxu3 %vm359_vm14, %v465_v0 }
  0xb1   :  { %355 = vmatmul.msk.bf16.vlgmr.msra.gmra.mxu2 %vm202_vm15, %v375_v1 }
  0xb2   :  { %361 = vmatmul.msk.bf16.vlgmr.msra.gmra.mxu3 %vm202_vm15, %v375_v1 }
  0xc1   :  { %356 = vmatmul.msk.bf16.gmra.mxu2 %vm202_vm15, %v376_v2 }
  0xc2   :  { %362 = vmatmul.msk.bf16.gmra.mxu3 %vm202_vm15, %v376_v2 }
 0x134   :  { %v218_v3 = vpop.f32.mrf.mxu2 }
 0x135   :  { %v237_v4 = vpop.f32.mrf.mxu3  ;;  %v219_v22 = vadd.f32 %v403_v15, %v218_v3 }
 0x136   :  { %v238_v26 = vadd.f32 %v403_v15, %v237_v4 }
 0x137   :  { %v247_v33 = vmul.f32 %v219_v22, %v516_v48 }
 0x138   :  { %v248_v34 = vmul.f32 %v238_v26, %v516_v48 }
 0x139   :  { %vm255_vm8 = vcmp.ge.f32.partialorder %v247_v33, 1.0 }
 0x13a   :  { %vm256_vm10 = vcmp.ge.f32.partialorder %v248_v34, 1.0 }
 0x13c   :  { %v220_v8 = vpop.f32.mrf.mxu2 }
 0x13d   :  { %v239_v9 = vpop.f32.mrf.mxu3  ;;  %v221_v19 = vadd.f32 %v404_v14, %v220_v8 }
 0x13e   :  { %v240_v20 = vadd.f32 %v404_v14, %v239_v9 }
 0x13f   :  { %v249_v29 = vmul.f32 %v221_v19, %v516_v48 }
 0x140   :  { %v250_v31 = vmul.f32 %v240_v20, %v516_v48 }
 0x141   :  { %vm257_vm6 = vcmp.ge.f32.partialorder %v249_v29, 1.0 }
 0x142   :  { %vm258_vm7 = vcmp.ge.f32.partialorder %v250_v31, 1.0  ;;  %vm365_vm9 = vmpackc.low %vm257_vm6, %vm255_vm8 }
 0x143   :  { %vm370_vm11 = vmpackc.low %vm258_vm7, %vm256_vm10 }
 0x144   :  { %v223_v10 = vpop.f32.mrf.mxu2 }
 0x145   :  { %v242_v12 = vpop.f32.mrf.mxu3  ;;  %v224_v16 = vadd.f32 %v398_v11, %v223_v10 }
 0x146   :  { %v243_v17 = vadd.f32 %v398_v11, %v242_v12 }
 0x147   :  { %v251_v23 = vmul.f32 %v224_v16, %v516_v48 }
 0x148   :  { %v252_v27 = vmul.f32 %v243_v17, %v516_v48 }
 0x149   :  { %vm259_vm0 = vcmp.ge.f32.partialorder %v251_v23, 1.0 }
 0x14a   :  { %vm260_vm3 = vcmp.ge.f32.partialorder %v252_v27, 1.0 }
 0x14c   :  { %v225_v21 = vpop.f32.mrf.mxu2 }
 0x14d   :  { %v226_v24 = vadd.f32 %v399_v18, %v225_v21  ;;  %v244_v25 = vpop.f32.mrf.mxu3 }
 0x14e   :  { %v245_v28 = vadd.f32 %v399_v18, %v244_v25 }
 0x14f   :  { %v253_v30 = vmul.f32 %v226_v24, %v516_v48 }
 0x150   :  { %v254_v32 = vmul.f32 %v245_v28, %v516_v48 }
 0x151   :  { %vm261_vm1 = vcmp.ge.f32.partialorder %v253_v30, 1.0 }
 0x152   :  { %vm363_vm2 = vmpackc.low %vm261_vm1, %vm259_vm0  ;;  %vm262_vm4 = vcmp.ge.f32.partialorder %v254_v32, 1.0 }
 0x153   :  { %364 = vmatpush.bf16.msk.msrb.mxu0 %vm363_vm2, %v465_v0  ;;  %vm368_vm5 = vmpackc.low %vm262_vm4, %vm260_vm3 }
 0x154   :  { %369 = vmatpush.bf16.msk.msrb.mxu1 %vm368_vm5, %v465_v0 }
 0x157   :  { %366 = vmatpush.bf16.msk.msrb.mxu0 %vm365_vm9, %v465_v0 }
 0x158   :  { %371 = vmatpush.bf16.msk.msrb.mxu1 %vm370_vm11, %v465_v0 }
 0x15a   :  { %367 = vmatmul.msk.bf16.vlgmr.msrb.gmra.mxu0 %vm202_vm15, %v275_v5 }
 0x15b   :  { %372 = vmatmul.msk.bf16.vlgmr.msrb.gmra.mxu1 %vm202_vm15, %v275_v5 }
 0x1d7   :  { %v294_v36 = vpop.f32.mrf.mxu0 }
 0x1d8   :  { %v307_v37 = vpop.f32.mrf.mxu1  ;;  %v295_v38 = vadd.f32 %v294_v36, %v280_v35 }
 0x1d9   :  { %v308_v39 = vadd.f32 %v307_v37, %v280_v35 }
 0x1da   :  { %311 = vst [vmem:[#allocation5] sm:$0xff] %v295_v38 }
 0x1db   :  { %313 = vst.msk [vmem:[#allocation5 + $0x8] sm:$0xff] %vm312_vm12, %v308_v39 }
 0x1dc   :  { %324 = dma.vmem_to_hbm [thread:$0]  %s320_s9, 256, %s322_s12, [#allocation4]  }
 0x1df   :  { %v296_v40 = vpop.f32.mrf.mxu0 }
 0x1e0   :  { %v309_v41 = vpop.f32.mrf.mxu1 }
 0x1e1   :  { %459 = dma.done.wait [#allocation4], 256  }
 0x1e2   :  { %460 = vsyncadd [#allocation4], 4294967040 }
 0x1e3   :  { %329 = vsyncpa [#allocation3], 1 }
 0x1e4   :  { %330 = vsyncpa [#allocation4], 1 }

</bundles_post_ra>
